<compile_context>
chip_gen: v7x
topology: tpu7x:2x2x1
jax: 0.10.0
libtpu: 0.0.40
codegen_flags: <defaults>
</compile_context>

<pallas_src>
import jax
import jax.numpy as jnp
from jax.experimental import pallas as pl
from jax.experimental.pallas import tpu as pltpu


# ---------------------------------------------------------------------------
# Copy kernel (only used when an explicit materialized copy is requested).
# ---------------------------------------------------------------------------
def _copy_kernel(x_ref, o_ref):
    # Whole-tile copy: load the current (block_r, cols) block, store unchanged.
    o_ref[...] = x_ref[...]


_TARGET_BLOCK_BYTES = 2 * 1024 * 1024  # ~2 MiB/block -> 4x (in+out, 2 bufs) = 8 MiB


def _choose_2d_layout(n_elems: int, last_dim: int):
    """Pick a lane-dense (rows, cols) flattening: cols a large multiple of 128."""
    for cols in (4096, 2048, 1024, 512, 256, 128):
        if n_elems % cols == 0:
            return n_elems // cols, cols
    # Fallback: keep the original trailing dim as the lane axis (full extent).
    return n_elems // last_dim, last_dim


def _choose_block_rows(rows: int, cols: int, itemsize: int) -> int:
    """Largest sublane-aligned row-block that keeps the block ~<= 2 MiB."""
    max_rows = max(1, _TARGET_BLOCK_BYTES // (cols * itemsize))
    if rows <= max_rows:
        return rows  # whole slab in one block (tiny input); full-extent dim is legal
    block_r = (max_rows // 8) * 8  # multiple of 8 sublanes
    if block_r == 0:
        block_r = rows  # extremely wide rows; fall back to full extent
    return block_r


def feature_contextualizer_copy(inp: jnp.ndarray) -> jnp.ndarray:
    """Materialized identity copy through a tiled, lane-dense Pallas kernel."""
    orig_shape = inp.shape
    n = inp.size
    last = orig_shape[-1] if inp.ndim > 0 else 1
    rows, cols = _choose_2d_layout(n, last)
    x2d = inp.reshape(rows, cols)

    block_r = _choose_block_rows(rows, cols, inp.dtype.itemsize)
    grid = (pl.cdiv(rows, block_r),)

    out2d = pl.pallas_call(
        _copy_kernel,
        out_shape=jax.ShapeDtypeStruct((rows, cols), inp.dtype),
        grid_spec=pltpu.PrefetchScalarGridSpec(
            num_scalar_prefetch=0,
            grid=grid,
            in_specs=[pl.BlockSpec((block_r, cols), lambda r: (r, 0))],
            out_specs=pl.BlockSpec((block_r, cols), lambda r: (r, 0)),
        ),
        compiler_params=pltpu.CompilerParams(
            dimension_semantics=("parallel",),       # megacore-friendly on v7x
            vmem_limit_bytes=32 * 1024 * 1024,       # explicit, safe on v5e/v6e/v7x
        ),
    )(x2d)
    return out2d.reshape(orig_shape)


# ---------------------------------------------------------------------------
# Forward (matches the PyTorch module's semantics).
# ---------------------------------------------------------------------------
def feature_contextualizer_forward(inp: jnp.ndarray,
                                   input_size: int,
                                   output_size: int,
                                   materialize: bool = False) -> jnp.ndarray:
    """Pallas equivalent of FeatureContextualizer.forward (identity)."""
    assert input_size == output_size
    assert inp.shape[-1] == input_size
    if not materialize:
        # Hot path: the module is an identity — do not launch a kernel at all.
        # Saves 2*B*S*D*itemsize of HBM traffic vs. a copy kernel.
        return inp
    return feature_contextualizer_copy(inp)


class FeatureContextualizerPallas:
    """Thin wrapper mirroring the PyTorch module's interface."""

    def __init__(self, input_size: int, output_size: int) -> None:
        self.input_size = input_size
        self.output_size = output_size
        # No parameters: the reference module's __init__ defines none.

    def get_output_dim(self) -> int:
        return self.output_size

    def get_input_dim(self) -> int:
        # NOTE: matches the (quirky) PyTorch reference, which returns output_size.
        return self.output_size

    def __call__(self, inp: jnp.ndarray) -> jnp.ndarray:
        return feature_contextualizer_forward(inp, self.input_size, self.output_size)


if __name__ == "__main__":
    key = jax.random.PRNGKey(0)

    batch, seq, hidden = 2, 8, 32
    x = jax.random.normal(key, (batch, seq, hidden), dtype=jnp.float32)

    module = FeatureContextualizerPallas(input_size=hidden, output_size=hidden)

    # 1) Default (optimized) path: identity pass-through, no kernel launched.
    out_fast = jax.block_until_ready(module(x))
    assert out_fast.shape == x.shape and out_fast.dtype == x.dtype
    assert bool(jnp.array_equal(out_fast, x))

    # 2) Materializing Pallas copy kernel (exercised once for validation).
    out_copy = jax.block_until_ready(feature_contextualizer_copy(x))
    assert out_copy.shape == x.shape and out_copy.dtype == x.dtype
    assert bool(jnp.array_equal(out_copy, x))

    print("KERNEL_OK")
</pallas_src>

<mosaic_0001>
module attributes {stable_mosaic.version = 11 : i64} {
  func.func @_copy_kernel(%arg0: i32, %arg1: memref<1x512xf32, #tpu.memory_space<vmem>>, %arg2: memref<1x512xf32, #tpu.memory_space<vmem>>) attributes {dimension_semantics = [#tpu.dimension_semantics<parallel>], iteration_bounds = array<i64: 1>, scalar_prefetch = 0 : i64, scratch_operands = 0 : i64, tpu.core_type = #tpu.core_type<tc>, window_params = [{transform_indices = @transform_0, window_bounds = array<i64: 1, 512>}, {transform_indices = @transform_1, window_bounds = array<i64: 1, 512>}]} {
    %c0 = arith.constant 0 : index
    %c0_0 = arith.constant 0 : index
    %0 = vector.load %arg1[%c0, %c0_0] : memref<1x512xf32, #tpu.memory_space<vmem>>, vector<1x512xf32>
    %c0_1 = arith.constant 0 : index
    %c0_2 = arith.constant 0 : index
    %1 = vector.load %arg2[%c0_1, %c0_2] : memref<1x512xf32, #tpu.memory_space<vmem>>, vector<1x512xf32>
    tpu.vector_store %arg2[%c0_1, %c0_2], %0 {strides = array<i32>} : memref<1x512xf32, #tpu.memory_space<vmem>>, vector<1x512xf32>,
    return
  }
  func.func @transform_0(%arg0: i32) -> (i32, i32) {
    %c0_i32 = arith.constant 0 : i32
    %c0_i32_0 = arith.constant 0 : i32
    return %arg0, %c0_i32 : i32, i32
  }
  func.func @transform_1(%arg0: i32) -> (i32, i32) {
    %c0_i32 = arith.constant 0 : i32
    %c0_i32_0 = arith.constant 0 : i32
    return %arg0, %c0_i32 : i32, i32
  }
}

</mosaic_0001>

<bundles_post_ra>
// kernel: tpu_custom_call.1
= control target key start
LH: loop header
LB: loop body
LE: loop exit
PB: predicated region body
PF: predicated region fallthrough
CT: control target
= control target key end

     0   :  { %6 = vsyncpa [#allocation3], 0  ;;  %s128_s0 = inlined_call_operand.hbm [shape: f32[1,512], index: 0, kind: input, shape index: {}]   ;;  %s129_s1 = inlined_call_operand.hbm [shape: f32[1,512], index: 1, kind: output, shape index: {}]  }
   0x1   :  { %7 = vsyncpa [#allocation4], 0  ;;  %s92_s6 = smov [#allocation2]   ;;  %s44_s10 = scalar_lea.hbm %s128_s0, 64 }
   0x2   :  { %s14_s7 = sshll.u32 %s92_s6, 4  ;;  %p45_p0 = scmp.ne.s32.totalorder %s128_s0, %s44_s10  ;;  %s15_s7 = int_to_ptr.vmem [resolvable:$true] %s14_s7 }
   0x3   :  { %p48_p1 = scmp.lt.u32.totalorder %s44_s10, %s128_s0 }
   0x5   :  { %p50_p2 = pnand %p48_p1, %p45_p0 }
   0x7   :  { %53 = shalt.err (!%p50_p2)
}
   0x8   :  { %s54_s15 = scalar_lea.vmem %s15_s7, 64  ;;  %p59_p4 = scmp.lt.s32.totalorder %s15_s7, %s15_s7 }
   0x9   :  { %p55_p3 = scmp.ne.s32.totalorder %s15_s7, %s54_s15  ;;  %p60_p5 = scmp.lt.s32.totalorder %s54_s15, %s54_s15 }
   0xb   :  { %p61_p6 = por %p60_p5, %p59_p4 }
   0xd   :  { %p62_p7 = pnand %p61_p6, %p55_p3 }
   0xf   :  { %65 = shalt.err (!%p62_p7)
}
  0x10   :  { %17 = dma.hbm_to_vmem [thread:$0]  %s128_s0, 64, %s15_s7, [#allocation3]  }
  0x11   :  { %88 = dma.done.wait [#allocation3], 64  }
  0x12   :  { %89 = vsyncadd [#allocation3], 4294967232  ;;  %v22_v0 = vlaneseq  ;;  %s93_s18 = smov [#allocation5]   ;;  %v21_v1 = vld [vmem:[#allocation2] sm:$0xf] }
  0x13   :  { %s33_s19 = sshll.u32 %s93_s18, 4  ;;  %s34_s19 = int_to_ptr.vmem [resolvable:$true] %s33_s19 }
  0x14   :  { %vm24_vm0 = vcmp.lt.s32.totalorder %v22_v0, 512  ;;  %s66_s20 = scalar_lea.vmem %s34_s19, 64  ;;  %p71_p9 = scmp.lt.s32.totalorder %s34_s19, %s34_s19 }
  0x15   :  { %26 = vst.msk [vmem:[#allocation5] sm:$0xf] %vm24_vm0, %v21_v1  ;;  %p67_p8 = scmp.ne.s32.totalorder %s34_s19, %s66_s20  ;;  %p72_p10 = scmp.lt.s32.totalorder %s66_s20, %s66_s20 }
  0x17   :  { %p73_p11 = por %p72_p10, %p71_p9 }
  0x19   :  { %p74_p12 = pnand %p73_p11, %p67_p8 }
  0x1b   :  { %77 = shalt.err (!%p74_p12)
}
  0x1c   :  { %s78_s0 = scalar_lea.hbm %s129_s1, 64 }
  0x1d   :  { %p79_p13 = scmp.ne.s32.totalorder %s129_s1, %s78_s0  ;;  %p82_p0 = scmp.lt.u32.totalorder %s78_s0, %s129_s1 }
  0x1f   :  { %p84_p1 = pnand %p82_p0, %p79_p13 }
  0x21   :  { %87 = shalt.err (!%p84_p1)
}
  0x22   :  { %36 = dma.vmem_to_hbm [thread:$0]  %s34_s19, 64, %s129_s1, [#allocation4]  }
  0x23   :  { %90 = dma.done.wait [#allocation4], 64  }
  0x24   :  { %91 = vsyncadd [#allocation4], 4294967232 }
  0x25   :  { %40 = vsyncpa [#allocation3], 1 }
  0x26   :  { %41 = vsyncpa [#allocation4], 1 }

</bundles_post_ra>
